<compile_context>
chip_gen: v5e
topology: v5e:2x2
jax: 0.10.0
libtpu: 0.0.40
codegen_flags: <defaults>
</compile_context>

<pallas_src>
import math
import functools

import jax
import jax.numpy as jnp
import numpy as np
from jax.experimental import pallas as pl
from jax.experimental.pallas import tpu as pltpu


def _prefers_bf16_matmul():
    """Default bf16 MXU inputs only on v5e (its MXU has no native f32 path)."""
    try:
        kind = jax.devices()[0].device_kind.lower()
    except Exception:
        return False
    return ("v5 lite" in kind) or ("v5e" in kind) or ("v5litepod" in kind)


def mha_kernel(qT_ref, f_ref, w_ref, b_ref, o_ref, *, bt, nf, e, na):
    """Fused projections + attention + output projection for one batch chunk.

    qT_ref : (E, A)      pre-projected, pre-scaled, pre-transposed queries
    f_ref  : (Bt, F, E)  f_feat chunk
    w_ref  : (3E, E)     stacked [Wk^T ; Wv^T ; Wo^T]
    b_ref  : (3, E)      stacked [bk ; bv ; bo]   (always f32)
    o_ref  : (Bt, A, E)  output chunk
    """
    cdt = qT_ref.dtype  # matmul input dtype: f32, or bf16 when use_bf16_matmul

    f2 = f_ref[...].reshape(bt * nf, e)            # layout-preserving (F % 8 == 0)

    # Static slices of the stacked buffers (views into VMEM, zero runtime cost).
    wk = w_ref[0 * e:1 * e, :]                     # (E, E)  Wk^T
    wv = w_ref[1 * e:2 * e, :]                     # (E, E)  Wv^T
    wo = w_ref[2 * e:3 * e, :]                     # (E, E)  Wo^T
    bk = b_ref[0:1, :]                             # (1, E)  f32
    bv = b_ref[1:2, :]
    bo = b_ref[2:3, :]

    # Separate K / V projections: same MXU push count as a fused (E, 2E) matmul at
    # N <= 128, and no lane-offset split/repack of a fused output.
    k2 = jnp.dot(f2, wk, preferred_element_type=jnp.float32) + bk    # (Bt*F, E) f32
    v2 = jnp.dot(f2, wv, preferred_element_type=jnp.float32) + bv    # (Bt*F, E) f32

    # Logits as one plain 2D MXU matmul against q^T (already scaled by 1/sqrt(E)).
    s = jnp.dot(k2.astype(cdt), qT_ref[...], preferred_element_type=jnp.float32)
    s = s.reshape(bt, nf, na)                      # (Bt, F, A)

    # Softmax over f (axis 1) == torch F.softmax(dim=2) on (b, 1, f, a).
    # Exact divide: the approx reciprocal saved nothing here but cost accuracy.
    s = s - jnp.max(s, axis=1, keepdims=True)
    p = jnp.exp(s)
    w_attn = p / jnp.sum(p, axis=1, keepdims=True)                    # (Bt, F, A)

    # attention[b, a, e] = sum_f w[b, f, a] * v[b, f, e]
    # Batched dot_general: no broadcast_to of q and no output transpose needed.
    attn = jnp.einsum('bfa,bfe->bae',
                      w_attn.astype(cdt),
                      v2.reshape(bt, nf, e).astype(cdt),
                      preferred_element_type=jnp.float32)             # (Bt, A, E) f32

    # Fused output projection; store (Bt, A, E) directly (no lane-pad round trip).
    o = jnp.dot(attn.reshape(bt * na, e).astype(cdt), wo,
                preferred_element_type=jnp.float32) + bo
    o_ref[...] = o.reshape(bt, na, e).astype(o_ref.dtype)


def mha_forward(s_feat, f_feat, params, *, batch_tile=None, use_bf16_matmul=None):
    """s_feat (A, E), f_feat (B, F, E), params = (wq,bq,wk,bk,wv,bv,wo,bo) torch layout.

    batch_tile: batch elements per grid step. Default = B (one fused grid step).
        Only split (e.g. B//2 to engage both v7x TensorCores) when the per-chunk
        compute (~2*Bt*F*E*2E + 2*Bt*A*F*E FLOPs) is several microseconds; at small
        shapes each extra grid step just adds ~0.35 us fixed overhead and a cross-TC
        split is a net loss. If shapes ever grow, re-derive Bt against VMEM and
        remember v7x has a 64 MiB ceiling (half of v5e/v6e); add vmem_limit_bytes then.
    use_bf16_matmul: None = auto (True on v5e, False on v6e/v7x). bf16 MXU inputs
        with f32 accumulation; softmax / biases / output stay f32.
    """
    wq, bq, wk, bk, wv, bv, wo, bo = params
    A, E = s_feat.shape
    B, Fk, E2 = f_feat.shape
    assert E2 == E
    # Layout-preserving in-kernel reshapes require 8-aligned merged sublane dims.
    assert A % 8 == 0, "A (rows of s_feat) must be a multiple of 8"
    assert Fk % 8 == 0, "F (f_feat sequence length) must be a multiple of 8"

    Bt = B if batch_tile is None else batch_tile
    assert B % Bt == 0, "batch_tile must divide the batch"

    if use_bf16_matmul is None:
        use_bf16_matmul = _prefers_bf16_matmul()
    cdt = jnp.bfloat16 if use_bf16_matmul else jnp.float32

    # ---- wrapper-side prep (tiny batch-invariant XLA ops, hoisted off the kernel) --
    # q projection + attention scale + transpose -> logits are a plain 2D matmul.
    qT = ((s_feat @ wq.T + bq) * (1.0 / math.sqrt(E))).T              # (E, A)
    # One stacked weight DMA instead of three; one stacked bias DMA instead of three.
    w_all = jnp.concatenate([wk.T, wv.T, wo.T], axis=0)               # (3E, E)
    b_all = jnp.stack([bk, bv, bo], axis=0).astype(jnp.float32)       # (3, E)

    qT = qT.astype(cdt)
    f_in = f_feat.astype(cdt)
    w_all = w_all.astype(cdt)

    itemsize = jnp.dtype(cdt).itemsize
    cost = pl.CostEstimate(
        flops=int(2 * B * Fk * E * E * 2          # K and V projections
                  + 2 * B * Fk * E * A            # logits
                  + 2 * B * A * Fk * E            # attention @ V
                  + 2 * B * A * E * E),           # output projection
        transcendentals=int(B * Fk * A),
        bytes_accessed=int(itemsize * (E * A + B * Fk * E + 3 * E * E)
                           + 4 * (3 * E)          # f32 biases
                           + 4 * (B * A * E)),    # f32 output
    )

    kernel = functools.partial(mha_kernel, bt=Bt, nf=Fk, e=E, na=A)
    out = pl.pallas_call(
        kernel,
        out_shape=jax.ShapeDtypeStruct((B, A, E), jnp.float32),
        grid=(B // Bt,),
        in_specs=[
            pl.BlockSpec((E, A), lambda i: (0, 0)),           # q^T (grid-invariant)
            pl.BlockSpec((Bt, Fk, E), lambda i: (i, 0, 0)),   # f_feat batch chunk
            pl.BlockSpec((3 * E, E), lambda i: (0, 0)),       # stacked [Wk^T;Wv^T;Wo^T]
            pl.BlockSpec((3, E), lambda i: (0, 0)),           # stacked [bk;bv;bo]
        ],
        out_specs=pl.BlockSpec((Bt, A, E), lambda i: (i, 0, 0)),
        compiler_params=pltpu.CompilerParams(
            dimension_semantics=("arbitrary",)),   # single step by default; no TC split
        cost_estimate=cost,
    )(qT, f_in, w_all, b_all)
    return out


def mha_reference(s_feat, f_feat, params):
    """Plain-JAX reference mirroring the torch forward exactly."""
    wq, bq, wk, bk, wv, bv, wo, bo = params
    E = s_feat.shape[-1]
    q = s_feat @ wq.T + bq                               # (A, E)
    k = f_feat @ wk.T + bk                               # (B, F, E)
    v = f_feat @ wv.T + bv                               # (B, F, E)
    logits = jnp.einsum('bfe,ae->bfa', k, q) / math.sqrt(E)
    w = jax.nn.softmax(logits, axis=1)                   # softmax over F (torch dim=2)
    attn = jnp.einsum('bfa,bfe->bae', w, v)
    return attn @ wo.T + bo


def make_params(key, embed_dim):
    """torch nn.Linear default init: U(-1/sqrt(in), 1/sqrt(in)) for weight and bias."""
    E = embed_dim
    ks = jax.random.split(key, 8)
    lim = 1.0 / math.sqrt(E)

    def w(k):
        return jax.random.uniform(k, (E, E), jnp.float32, -lim, lim)

    def b(k):
        return jax.random.uniform(k, (E,), jnp.float32, -lim, lim)

    return (w(ks[0]), b(ks[1]), w(ks[2]), b(ks[3]),
            w(ks[4]), b(ks[5]), w(ks[6]), b(ks[7]))


if __name__ == "__main__":
    A, E = 8, 32     # s_feat: (A, E)
    B, Fk = 2, 16    # f_feat: (B, F, E)

    key = jax.random.PRNGKey(0)
    kp, ksd, kfd = jax.random.split(key, 3)
    s_feat = jax.random.normal(ksd, (A, E), dtype=jnp.float32)
    f_feat = jax.random.normal(kfd, (B, Fk, E), dtype=jnp.float32)
    params = make_params(kp, E)

    ref = mha_reference(s_feat, f_feat, params)

    # Default (auto-precision) path.
    out = jax.block_until_ready(mha_forward(s_feat, f_feat, params))
    default_tol = 3e-2 if _prefers_bf16_matmul() else 1e-5
    np.testing.assert_allclose(np.asarray(out), np.asarray(ref),
                               rtol=default_tol, atol=default_tol)

    # Exercise both precision paths explicitly (review correctness concern).
    out_f32 = jax.block_until_ready(
        mha_forward(s_feat, f_feat, params, use_bf16_matmul=False))
    np.testing.assert_allclose(np.asarray(out_f32), np.asarray(ref),
                               rtol=1e-5, atol=1e-5)

    out_bf16 = jax.block_until_ready(
        mha_forward(s_feat, f_feat, params, use_bf16_matmul=True))
    np.testing.assert_allclose(np.asarray(out_bf16), np.asarray(ref),
                               rtol=3e-2, atol=3e-2)

    print("KERNEL_OK")
</pallas_src>

<mosaic_0001>
module attributes {stable_mosaic.version = 11 : i64} {
  func.func @mha_kernel(%arg0: i32, %arg1: memref<32x8xf32, #tpu.memory_space<vmem>>, %arg2: memref<2x16x32xf32, #tpu.memory_space<vmem>>, %arg3: memref<96x32xf32, #tpu.memory_space<vmem>>, %arg4: memref<3x32xf32, #tpu.memory_space<vmem>>, %arg5: memref<2x8x32xf32, #tpu.memory_space<vmem>>) attributes {dimension_semantics = [#tpu.dimension_semantics<arbitrary>], iteration_bounds = array<i64: 1>, scalar_prefetch = 0 : i64, scratch_operands = 0 : i64, tpu.core_type = #tpu.core_type<tc>, window_params = [{pipeline_mode = #tpu.pipeline_mode<synchronous>, transform_indices = @transform_0, window_bounds = array<i64: 32, 8>}, {transform_indices = @transform_1, window_bounds = array<i64: 2, 16, 32>}, {pipeline_mode = #tpu.pipeline_mode<synchronous>, transform_indices = @transform_2, window_bounds = array<i64: 96, 32>}, {pipeline_mode = #tpu.pipeline_mode<synchronous>, transform_indices = @transform_3, window_bounds = array<i64: 3, 32>}, {transform_indices = @transform_4, window_bounds = array<i64: 2, 8, 32>}]} {
    %c0 = arith.constant 0 : index
    %c0_0 = arith.constant 0 : index
    %c0_1 = arith.constant 0 : index
    %0 = vector.load %arg2[%c0, %c0_0, %c0_1] : memref<2x16x32xf32, #tpu.memory_space<vmem>>, vector<2x16x32xf32>
    %1 = vector.shape_cast %0 : vector<2x16x32xf32> to vector<32x32xf32>
    %c0_2 = arith.constant 0 : index
    %c0_3 = arith.constant 0 : index
    %2 = vector.load %arg3[%c0_2, %c0_3] : memref<96x32xf32, #tpu.memory_space<vmem>>, vector<32x32xf32>
    %c32 = arith.constant 32 : index
    %c0_4 = arith.constant 0 : index
    %3 = vector.load %arg3[%c32, %c0_4] : memref<96x32xf32, #tpu.memory_space<vmem>>, vector<32x32xf32>
    %c64 = arith.constant 64 : index
    %c0_5 = arith.constant 0 : index
    %4 = vector.load %arg3[%c64, %c0_5] : memref<96x32xf32, #tpu.memory_space<vmem>>, vector<32x32xf32>
    %c0_6 = arith.constant 0 : index
    %c0_7 = arith.constant 0 : index
    %5 = vector.load %arg4[%c0_6, %c0_7] : memref<3x32xf32, #tpu.memory_space<vmem>>, vector<1x32xf32>
    %c1 = arith.constant 1 : index
    %c0_8 = arith.constant 0 : index
    %6 = vector.load %arg4[%c1, %c0_8] : memref<3x32xf32, #tpu.memory_space<vmem>>, vector<1x32xf32>
    %c2 = arith.constant 2 : index
    %c0_9 = arith.constant 0 : index
    %7 = vector.load %arg4[%c2, %c0_9] : memref<3x32xf32, #tpu.memory_space<vmem>>, vector<1x32xf32>
    %cst = arith.constant dense<0.000000e+00> : vector<32x32xf32>
    %8 = tpu.matmul %1, %2, %cst {dimension_numbers = #tpu.dot_dimension_numbers<[1], [0], [0], [1], [0, 0, 1, 1], [], []>} : vector<32x32xf32>, vector<32x32xf32>, vector<32x32xf32> -> vector<32x32xf32>
    %9 = vector.broadcast %5 : vector<1x32xf32> to vector<32x32xf32>
    %10 = arith.addf %8, %9 : vector<32x32xf32>
    %cst_10 = arith.constant dense<0.000000e+00> : vector<32x32xf32>
    %11 = tpu.matmul %1, %3, %cst_10 {dimension_numbers = #tpu.dot_dimension_numbers<[1], [0], [0], [1], [0, 0, 1, 1], [], []>} : vector<32x32xf32>, vector<32x32xf32>, vector<32x32xf32> -> vector<32x32xf32>
    %12 = vector.broadcast %6 : vector<1x32xf32> to vector<32x32xf32>
    %13 = arith.addf %11, %12 : vector<32x32xf32>
    %c0_11 = arith.constant 0 : index
    %c0_12 = arith.constant 0 : index
    %14 = vector.load %arg1[%c0_11, %c0_12] : memref<32x8xf32, #tpu.memory_space<vmem>>, vector<32x8xf32>
    %cst_13 = arith.constant dense<0.000000e+00> : vector<32x8xf32>
    %15 = tpu.matmul %10, %14, %cst_13 {dimension_numbers = #tpu.dot_dimension_numbers<[1], [0], [0], [1], [0, 0, 1, 1], [], []>} : vector<32x32xf32>, vector<32x8xf32>, vector<32x8xf32> -> vector<32x8xf32>
    %16 = vector.shape_cast %15 : vector<32x8xf32> to vector<2x16x8xf32>
    %cst_14 = arith.constant dense<0xFF800000> : vector<2x8xf32>
    %17 = vector.multi_reduction <maximumf>, %16, %cst_14 [1] : vector<2x16x8xf32> to vector<2x8xf32>
    %18 = vector.shape_cast %17 : vector<2x8xf32> to vector<2x1x8xf32>
    %19 = vector.broadcast %18 : vector<2x1x8xf32> to vector<2x16x8xf32>
    %20 = arith.subf %16, %19 : vector<2x16x8xf32>
    %21 = math.exp %20 : vector<2x16x8xf32>
    %cst_15 = arith.constant dense<0.000000e+00> : vector<2x8xf32>
    %22 = vector.multi_reduction <add>, %21, %cst_15 [1] : vector<2x16x8xf32> to vector<2x8xf32>
    %23 = vector.shape_cast %22 : vector<2x8xf32> to vector<2x1x8xf32>
    %24 = vector.broadcast %23 : vector<2x1x8xf32> to vector<2x16x8xf32>
    %25 = arith.divf %21, %24 : vector<2x16x8xf32>
    %26 = vector.shape_cast %13 : vector<32x32xf32> to vector<2x16x32xf32>
    "tpu.trace_start"() <{level = 10 : i32, message = "bfa,bfe->bae"}> : () -> ()
    %cst_16 = arith.constant dense<0.000000e+00> : vector<2x8x32xf32>
    %27 = tpu.matmul %25, %26, %cst_16 {dimension_numbers = #tpu.dot_dimension_numbers<[1], [1], [2], [2], [0, 0, 0, 2, 1, 2], [0], [0]>} : vector<2x16x8xf32>, vector<2x16x32xf32>, vector<2x8x32xf32> -> vector<2x8x32xf32>
    "tpu.trace_stop"() : () -> ()
    %28 = vector.shape_cast %27 : vector<2x8x32xf32> to vector<16x32xf32>
    %cst_17 = arith.constant dense<0.000000e+00> : vector<16x32xf32>
    %29 = tpu.matmul %28, %4, %cst_17 {dimension_numbers = #tpu.dot_dimension_numbers<[1], [0], [0], [1], [0, 0, 1, 1], [], []>} : vector<16x32xf32>, vector<32x32xf32>, vector<16x32xf32> -> vector<16x32xf32>
    %30 = vector.broadcast %7 : vector<1x32xf32> to vector<16x32xf32>
    %31 = arith.addf %29, %30 : vector<16x32xf32>
    %32 = vector.shape_cast %31 : vector<16x32xf32> to vector<2x8x32xf32>
    %c0_18 = arith.constant 0 : index
    %c0_19 = arith.constant 0 : index
    %c0_20 = arith.constant 0 : index
    %33 = vector.load %arg5[%c0_18, %c0_19, %c0_20] : memref<2x8x32xf32, #tpu.memory_space<vmem>>, vector<2x8x32xf32>
    tpu.vector_store %arg5[%c0_18, %c0_19, %c0_20], %32 {strides = array<i32>} : memref<2x8x32xf32, #tpu.memory_space<vmem>>, vector<2x8x32xf32>,
    return
  }
  func.func @transform_0(%arg0: i32) -> (i32, i32) {
    %c0_i32 = arith.constant 0 : i32
    %c0_i32_0 = arith.constant 0 : i32
    %c0_i32_1 = arith.constant 0 : i32
    return %c0_i32, %c0_i32_0 : i32, i32
  }
  func.func @transform_1(%arg0: i32) -> (i32, i32, i32) {
    %c0_i32 = arith.constant 0 : i32
    %c0_i32_0 = arith.constant 0 : i32
    %c0_i32_1 = arith.constant 0 : i32
    return %arg0, %c0_i32, %c0_i32_0 : i32, i32, i32
  }
  func.func @transform_2(%arg0: i32) -> (i32, i32) {
    %c0_i32 = arith.constant 0 : i32
    %c0_i32_0 = arith.constant 0 : i32
    %c0_i32_1 = arith.constant 0 : i32
    return %c0_i32, %c0_i32_0 : i32, i32
  }
  func.func @transform_3(%arg0: i32) -> (i32, i32) {
    %c0_i32 = arith.constant 0 : i32
    %c0_i32_0 = arith.constant 0 : i32
    %c0_i32_1 = arith.constant 0 : i32
    return %c0_i32, %c0_i32_0 : i32, i32
  }
  func.func @transform_4(%arg0: i32) -> (i32, i32, i32) {
    %c0_i32 = arith.constant 0 : i32
    %c0_i32_0 = arith.constant 0 : i32
    %c0_i32_1 = arith.constant 0 : i32
    return %arg0, %c0_i32, %c0_i32_0 : i32, i32, i32
  }
}

</mosaic_0001>

<bundles_post_ra>
// kernel: tpu_custom_call.1
= control target key start
LH: loop header
LB: loop body
LE: loop exit
PB: predicated region body
PF: predicated region fallthrough
CT: control target
= control target key end

     0   :  { %s598_s0 = inlined_call_operand.vmem [shape: f32[32,8], index: 0, kind: input, shape index: {}]   ;;  %s599_s1 = inlined_call_operand.vmem [shape: f32[2,16,32], index: 1, kind: input, shape index: {}]   ;;  %s600_s2 = inlined_call_operand.vmem [shape: f32[96,32], index: 2, kind: input, shape index: {}]   ;;  %s601_s3 = inlined_call_operand.vmem [shape: f32[3,32], index: 3, kind: input, shape index: {}]   ;;  %s602_s4 = inlined_call_operand.hbm [shape: f32[2,8,32], index: 4, kind: output, shape index: {}]  }
   0x1   :  { %v25_v0 = vld [vmem:[%s600_s2 + $0x18] sm:$0xff]  ;;  %v24_v1 = vld [vmem:[%s600_s2 + $0x10] sm:$0xff]  ;;  %v23_v2 = vld [vmem:[%s600_s2 + $0x8] sm:$0xff] }
   0x2   :  { %63 = vmatpush.msra.mxu0 %v25_v0  ;;  %v113_v3 = vld [vmem:[%s598_s0 + $0x18] sm:$0xff]  ;;  %v22_v4 = vld [vmem:[%s600_s2] sm:$0xff]  ;;  %v112_v5 = vld [vmem:[%s598_s0 + $0x10] sm:$0xff] }
   0x3   :  { %138 = vmatpush.msra.mxu2 %v113_v3 }
   0x4   :  { %64 = vmatpush.msra.mxu0 %v24_v1 }
   0x5   :  { %9 = vsyncpa [#allocation3], 0  ;;  %v507_v6 = vld [vmem:[%s599_s1] sm:$0xff]  ;;  %vm38_vm0 = vcmask 261120   ;;  %139 = vmatpush.msra.mxu2 %v112_v5  ;;  %v514_v7 = vld [vmem:[%s599_s1 + $0x8] sm:$0xff]  ;;  %vm155_vm1 = vcmask 64512  }
   0x6   :  { %65 = vmatpush.msra.mxu0 %v23_v2  ;;  %v521_v8 = vld [vmem:[%s599_s1 + $0x10] sm:$0xff]  ;;  %v528_v9 = vld [vmem:[%s599_s1 + $0x18] sm:$0xff]  ;;  %v111_v10 = vld [vmem:[%s598_s0 + $0x8] sm:$0xff]  ;;  %vm268_vm10 = vcmask 130048   ;;  %s458_s7 = smov [#allocation2]   ;;  %s385_s10 = sshll.u32 %s602_s4, 4  ;;  %s386_s10 = int_to_ptr.hbm [resolvable:$true] %s385_s10 }
   0x7   :  { %140 = vmatpush.msra.mxu2 %v111_v10  ;;  %v110_v11 = vld [vmem:[%s598_s0] sm:$0xff]  ;;  %v29_v52 = vld [vmem:[%s600_s2 + $0x38] sm:$0xff]  ;;  %v28_v53 = vld [vmem:[%s600_s2 + $0x30] sm:$0xff]  ;;  %s459_s11 = smov 128   ;;  %s460_s12 = smov 8  }
   0x8   :  { %66 = vmatpush.msra.mxu0 %v22_v4  ;;  %v417_v12 = vld [vmem:[%s601_s3] ss:$0 sm:$0xff]  ;;  %93 = vmatpush.msra.mxu1 %v29_v52  ;;  %v27_v57 = vld [vmem:[%s600_s2 + $0x28] sm:$0xff] }
   0x9   :  { %397 = vmatmul.msk.f32.vlgmr.msra.gmra.mxu0 %vm38_vm0, %v507_v6  ;;  %141 = vmatpush.msra.mxu2 %v110_v11  ;;  %v26_v63 = vld [vmem:[%s600_s2 + $0x20] sm:$0xff] }
   0xa   :  { %94 = vmatpush.msra.mxu1 %v28_v53 }
   0xc   :  { %95 = vmatpush.msra.mxu1 %v27_v57 }
   0xe   :  { %96 = vmatpush.msra.mxu1 %v26_v63 }
   0xf   :  { %401 = vmatmul.msk.f32.vlgmr.msra.gmra.mxu1 %vm38_vm0, %v507_v6 }
  0x11   :  { %398 = vmatmul.msk.f32.gmra.mxu0 %vm38_vm0, %v514_v7 }
  0x17   :  { %402 = vmatmul.msk.f32.gmra.mxu1 %vm38_vm0, %v514_v7 }
  0x19   :  { %399 = vmatmul.msk.f32.gmra.mxu0 %vm38_vm0, %v521_v8 }
  0x1f   :  { %403 = vmatmul.msk.f32.gmra.mxu1 %vm38_vm0, %v521_v8 }
  0x21   :  { %400 = vmatmul.msk.f32.gmra.mxu0 %vm38_vm0, %v528_v9 }
  0x27   :  { %404 = vmatmul.msk.f32.gmra.mxu1 %vm38_vm0, %v528_v9 }
  0x86   :  { %v68_v13 = vpop.f32.mrf.mxu0 }
  0x87   :  { %v69_v14 = vadd.f32 %v417_v12, %v68_v13 }
  0x89   :  { %405 = vmatmul.msk.f32.vlgmr.msra.gmra.mxu2 %vm38_vm0, %v69_v14 }
  0x8c   :  { %v98_v9 = vpop.f32.mrf.mxu1 }
  0x8e   :  { %v71_v15 = vpop.f32.mrf.mxu0 }
  0x8f   :  { %v72_v16 = vadd.f32 %v417_v12, %v71_v15 }
  0x91   :  { %406 = vmatmul.msk.f32.gmra.mxu2 %vm38_vm0, %v72_v16 }
  0x96   :  { %v74_v17 = vpop.f32.mrf.mxu0 }
  0x97   :  { %v75_v18 = vadd.f32 %v417_v12, %v74_v17 }
  0x99   :  { %407 = vmatmul.msk.f32.gmra.mxu2 %vm38_vm0, %v75_v18 }
  0x9e   :  { %v77_v19 = vpop.f32.mrf.mxu0 }
  0x9f   :  { %v78_v20 = vadd.f32 %v417_v12, %v77_v19 }
  0xa1   :  { %408 = vmatmul.msk.f32.gmra.mxu2 %vm38_vm0, %v78_v20 }
 0x10c   :  { %v143_v21 = vpop.f32.mrf.mxu2 }
 0x10d   :  { %v156_v23 = vsel %vm155_vm1, %v143_v21, -inf }
 0x114   :  { %v146_v22 = vpop.f32.mrf.mxu2 }
 0x115   :  { %v157_v24 = vsel %vm155_vm1, %v146_v22, -inf }
 0x116   :  { %v158_v25 = vmax.f32 %v156_v23, %v157_v24 }
 0x118   :  { %v159_v26 = vrot.slane %v158_v25, 4 }
 0x11a   :  { %v160_v27 = vmax.f32 %v158_v25, %v159_v26 }
 0x11c   :  { %v161_v28 = vrot.slane %v160_v27, 2  ;;  %v149_v29 = vpop.f32.mrf.mxu2 }
 0x11d   :  { %v165_v36 = vsel %vm155_vm1, %v149_v29, -inf }
 0x11e   :  { %v162_v30 = vmax.f32 %v160_v27, %v161_v28 }
 0x120   :  { %v163_v31 = vrot.slane %v162_v30, 1 }
 0x122   :  { %v164_v32 = vmax.f32 %v162_v30, %v163_v31 }
 0x124   :  { %v174_v33 = vsub.f32 %v143_v21, %v164_v32  ;;  %v175_v34 = vsub.f32 %v146_v22, %v164_v32  ;;  %v152_v35 = vpop.f32.mrf.mxu2 }
 0x125   :  { %v166_v37 = vsel %vm155_vm1, %v152_v35, -inf }
 0x126   :  { %v178_v38 = vmul.f32 1.442695, %v174_v33  ;;  %v180_v39 = vmul.f32 1.442695, %v175_v34  ;;  %v167_v40 = vmax.f32 %v165_v36, %v166_v37 }
 0x128   :  { %420 = vpow2.f32 %v178_v38  ;;  %v168_v41 = vrot.slane %v167_v40, 4  ;;  %v418_v38 = vld [vmem:[%s601_s3 + $0x1] ss:$0 sm:$0xff] }
 0x129   :  { %422 = vpow2.f32 %v180_v39  ;;  %v101_v39 = vpop.f32.mrf.mxu1 }
 0x12a   :  { %v169_v42 = vmax.f32 %v167_v40, %v168_v41  ;;  %v99_v40 = vadd.f32 %v418_v38, %v98_v9  ;;  %v102_v41 = vadd.f32 %v418_v38, %v101_v39 }
 0x12c   :  { %v170_v43 = vrot.slane %v169_v42, 2  ;;  %286 = vmatpush.msra.mxu3 %v102_v41 }
 0x12e   :  { %v421_v44 = vpop.eup %420  ;;  %v171_v45 = vmax.f32 %v169_v42, %v170_v43  ;;  %287 = vmatpush.msra.mxu3 %v99_v40 }
 0x12f   :  { %v423_v46 = vpop.eup %422  ;;  %v186_v47 = vsel %vm155_vm1, %v421_v44, 0.0 }
 0x130   :  { %v187_v48 = vsel %vm155_vm1, %v423_v46, 0.0  ;;  %v172_v49 = vrot.slane %v171_v45, 1 }
 0x131   :  { %v188_v50 = vadd.f32 %v187_v48, %v186_v47  ;;  %v104_v42 = vpop.f32.mrf.mxu1  ;;  %v32_v48 = vld [vmem:[%s600_s2 + $0x50] sm:$0xff] }
 0x132   :  { %v173_v51 = vmax.f32 %v171_v45, %v172_v49  ;;  %v31_v49 = vld [vmem:[%s600_s2 + $0x48] sm:$0xff] }
 0x133   :  { %v189_v54 = vrot.slane %v188_v50, 4 }
 0x134   :  { %v176_v55 = vsub.f32 %v149_v29, %v173_v51  ;;  %v177_v56 = vsub.f32 %v152_v35, %v173_v51 }
 0x135   :  { %v190_v58 = vadd.f32 %v189_v54, %v188_v50  ;;  %v30_v50 = vld [vmem:[%s600_s2 + $0x40] sm:$0xff] }
 0x136   :  { %v182_v59 = vmul.f32 1.442695, %v176_v55  ;;  %v184_v60 = vmul.f32 1.442695, %v177_v56  ;;  %v419_v54 = vld [vmem:[%s601_s3 + $0x2] ss:$0 sm:$0xff] }
 0x137   :  { %v191_v61 = vrot.slane %v190_v58, 2 }
 0x138   :  { %424 = vpow2.f32 %v182_v59 }
 0x139   :  { %v192_v62 = vadd.f32 %v191_v61, %v190_v58  ;;  %426 = vpow2.f32 %v184_v60  ;;  %v107_v43 = vpop.f32.mrf.mxu1 }
 0x13a   :  { %v108_v45 = vadd.f32 %v418_v38, %v107_v43 }
 0x13b   :  { %v193_v0 = vrot.slane %v192_v62, 1 }
 0x13c   :  { %341 = vmatpush.msrb.mxu3 %v108_v45 }
 0x13d   :  { %v194_v1 = vadd.f32 %v193_v0, %v192_v62 }
 0x13e   :  { %v425_v2 = vpop.eup %424 }
 0x13f   :  { %v427_v3 = vpop.eup %426  ;;  %v195_v4 = vsel %vm155_vm1, %v425_v2, 0.0  ;;  %428 = vrcp.f32 %v194_v1  ;;  %v215_v6 = vand.u32 2147483648, %v194_v1  ;;  %v213_v19 = vand.u32 2147483647, %v194_v1 }
 0x140   :  { %v196_v5 = vsel %vm155_vm1, %v427_v3, 0.0  ;;  %vm209_vm3 = vweird.f32 %v194_v1 }
 0x141   :  { %v197_v10 = vadd.f32 %v196_v5, %v195_v4  ;;  %v216_v23 = vor.u32 1.1754944e-38, %v215_v6  ;;  %vm214_vm5 = vcmp.eq.f32.partialorder %v213_v19, 8.507059e+37 }
 0x143   :  { %v198_v11 = vrot.slane %v197_v10, 4 }
 0x145   :  { %v429_v12 = vpop.eup %428  ;;  %v199_v13 = vadd.f32 %v198_v11, %v197_v10 }
 0x146   :  { %v205_v14 = vmul.f32 %v429_v12, %v194_v1  ;;  %vm210_vm2 = vweird.f32 %v429_v12 }
 0x147   :  { %v200_v15 = vrot.slane %v199_v13, 2  ;;  %vm211_vm4 = vmor %vm209_vm3, %vm210_vm2 }
 0x148   :  { %v206_v16 = vsub.f32 1.0, %v205_v14 }
 0x149   :  { %v201_v17 = vadd.f32 %v200_v15, %v199_v13 }
 0x14a   :  { %v207_v18 = vmul.f32 %v429_v12, %v206_v16 }
 0x14b   :  { %v202_v20 = vrot.slane %v201_v17, 1 }
 0x14c   :  { %v208_v21 = vadd.f32 %v429_v12, %v207_v18 }
 0x14d   :  { %v203_v22 = vadd.f32 %v202_v20, %v201_v17 }
 0x14e   :  { %v212_v7 = vsel %vm211_vm4, %v429_v12, %v208_v21 }
 0x14f   :  { %430 = vrcp.f32 %v203_v22  ;;  %v217_v24 = vsel %vm214_vm5, %v216_v23, %v212_v7  ;;  %v231_v30 = vand.u32 2147483648, %v203_v22  ;;  %v229_v8 = vand.u32 2147483647, %v203_v22 }
 0x150   :  { %v218_v25 = vmul.f32 %v421_v44, %v217_v24  ;;  %v219_v28 = vmul.f32 %v423_v46, %v217_v24  ;;  %vm225_vm7 = vweird.f32 %v203_v22  ;;  %v105_v44 = vadd.f32 %v418_v38, %v104_v42  ;;  %v33_v46 = vld [vmem:[%s600_s2 + $0x58] sm:$0xff]  ;;  %s383_s2 = sshll.u32 %s458_s7, 4  ;;  %s384_s2 = int_to_ptr.vmem [resolvable:$true] %s383_s2 }
 0x151   :  { %v232_v33 = vor.u32 1.1754944e-38, %v231_v30  ;;  %vm230_vm9 = vcmp.eq.f32.partialorder %v229_v8, 8.507059e+37 }
 0x152   :  { %236 = vxpose.xlu0.b32.start [1/2] (short) (narrow) %v218_v25, 8  ;;  %342 = vmatpush.msrb.mxu3 %v105_v44 }
 0x155   :  { %v431_v26 = vpop.eup %430 }
 0x156   :  { %v221_v27 = vmul.f32 %v431_v26, %v203_v22  ;;  %vm226_vm6 = vweird.f32 %v431_v26 }
 0x157   :  { %vm227_vm8 = vmor %vm225_vm7, %vm226_vm6 }
 0x158   :  { %v222_v29 = vsub.f32 1.0, %v221_v27 }
 0x15a   :  { %237 = vxpose.xlu0.b32.end [2/2] (short) (narrow) %v219_v28, 8  ;;  %v223_v31 = vmul.f32 %v431_v26, %v222_v29 }
 0x15c   :  { %v224_v32 = vadd.f32 %v431_v26, %v223_v31 }
 0x15e   :  { %v228_v34 = vsel %vm227_vm8, %v431_v26, %v224_v32 }
 0x15f   :  { %v233_v35 = vsel %vm230_vm9, %v232_v33, %v228_v34 }
 0x160   :  { %v234_v36 = vmul.f32 %v425_v2, %v233_v35  ;;  %v235_v37 = vmul.f32 %v427_v3, %v233_v35 }
 0x162   :  { %292 = vxpose.xlu1.b32.start [1/2] (short) (narrow) %v234_v36, 8 }
 0x16a   :  { %293 = vxpose.xlu1.b32.end [2/2] (short) (narrow) %v235_v37, 8 }
 0x1f6   :  { %v252_v47 = vpop.trf.xlu0 }
 0x1f7   :  { %409 = vmatmul.msk.f32.vlgmr.msra.gmra.mxu3 %vm268_vm10, %v252_v47 }
 0x1f8   :  { %366 = vmatpush.msra.mxu3 %v33_v46 }
 0x1fa   :  { %367 = vmatpush.msra.mxu3 %v32_v48 }
 0x1fc   :  { %368 = vmatpush.msra.mxu3 %v31_v49 }
 0x1fe   :  { %369 = vmatpush.msra.mxu3 %v30_v50 }
 0x206   :  { %v308_v51 = vpop.trf.xlu1 }
 0x207   :  { %410 = vmatmul.msk.f32.vlgmr.msrb.gmra.mxu3 %vm268_vm10, %v308_v51 }
 0x27a   :  { %v289_v52 = vpop.f32.mrf.mxu3 }
 0x27b   :  { %411 = vmatmul.msk.f32.vlgmr.msra.gmra.mxu3 %vm38_vm0, %v289_v52 }
 0x28a   :  { %v344_v53 = vpop.f32.mrf.mxu3 }
 0x28b   :  { %412 = vmatmul.msk.f32.gmra.mxu3 %vm38_vm0, %v344_v53 }
 0x2fe   :  { %v371_v55 = vpop.f32.mrf.mxu3 }
 0x2ff   :  { %v372_v56 = vadd.f32 %v419_v54, %v371_v55 }
 0x301   :  { %377 = vst.msk [vmem:[#allocation2] sm:$0xff] %vm38_vm0, %v372_v56 }
 0x30e   :  { %v374_v57 = vpop.f32.mrf.mxu3 }
 0x30f   :  { %v375_v58 = vadd.f32 %v419_v54, %v374_v57 }
 0x311   :  { %378 = vst.msk [vmem:[#allocation2 + $0x8] sm:$0xff] %vm38_vm0, %v375_v58 }
 0x312   :  { %391 = dma.vmem_to_hbm [thread:$0]  %s384_s2, 256, %s386_s10, [#allocation3], %s459_s11, %s459_s11, %s460_s12  }
 0x313   :  { %456 = dma.done.wait [#allocation3], 256  }
 0x314   :  { %457 = vsyncadd [#allocation3], 4294967040 }
 0x315   :  { %396 = vsyncpa [#allocation3], 1 }

</bundles_post_ra>
